<compile_context>
chip_gen: v5e
topology: v5e:2x2
jax: 0.10.0
libtpu: 0.0.40
codegen_flags: <defaults>
</compile_context>

<pallas_src>
import functools

import jax
import jax.numpy as jnp
from jax.experimental import pallas as pl
from jax.experimental.pallas import tpu as pltpu

NEG_BIG = -1e30        # logit value for padded action columns -> exp() flushes to 0


def _round_up(x, m):
    return ((x + m - 1) // m) * m


def policy_net_kernel(x_ref, w1_ref, b1_ref, w2_ref, b2_ref, out_ref, *, exp_dtype):
    """fc1 -> ReLU -> fc2 -> softmax for one (TB, S) batch tile."""
    # fc1 + ReLU. x is cast to the weights' MXU dtype in-kernel (no-op for f32);
    # accumulation is f32 on the MXU and the epilogue stays f32 (v5e-friendly).
    h = jnp.dot(x_ref[...].astype(w1_ref.dtype), w1_ref[...],
                preferred_element_type=jnp.float32) + b1_ref[...]
    h = jnp.maximum(h, 0.0)                                            # [TB, H] f32

    # fc2 -> logits over the compact (A_store) action columns.
    logits = jnp.dot(h.astype(w2_ref.dtype), w2_ref[...],
                     preferred_element_type=jnp.float32) + b2_ref[...]  # [TB, A_store]

    # Softmax over the action axis; pad columns hold -1e30 -> exp == 0 exactly.
    m = jnp.max(logits, axis=-1, keepdims=True)
    e = jnp.exp((logits - m).astype(exp_dtype)).astype(jnp.float32)
    denom = jnp.sum(e, axis=-1, keepdims=True)                          # >= 1 always

    # EUP approximate reciprocal + one Newton step (keeps ~f32 accuracy, frees VPU).
    r = pl.reciprocal(denom, approx=True)
    r = r * (2.0 - denom * r)
    out_ref[...] = (e * r).astype(out_ref.dtype)


def policy_net_forward(x, w1, b1, w2, b2, *, block_b=2048,
                       mxu_dtype=jnp.float32,
                       exp_dtype=jnp.float32,
                       out_dtype=jnp.float32):
    """PolicyNet forward. x: [B, S]; w1: [S, H]; b1: [H]/[1,H]; w2: [H, A]; b2: [A]/[1,A].

    Returns [B, A] action probabilities, matching
    softmax(relu(x @ w1 + b1) @ w2 + b2, axis=1).
    """
    B, S = x.shape
    H = w1.shape[1]
    A = w2.shape[1]

    # Compact output columns: round A up to 8 words (32 B rows). If A is already
    # large, round to full 128-lane groups so stores stay unmasked/lane-dense.
    A_store = _round_up(A, 128) if A >= 128 else _round_up(A, 8)

    b1 = jnp.reshape(b1, (1, H)).astype(jnp.float32)
    b2 = jnp.reshape(b2, (1, A)).astype(jnp.float32)

    # fc2 weight/bias padded to A_store columns (zero weights, -1e30 bias on pads).
    if A_store == A:
        w2_p = w2.astype(mxu_dtype)
        b2_p = b2
    else:
        w2_p = jnp.zeros((H, A_store), mxu_dtype).at[:, :A].set(w2.astype(mxu_dtype))
        b2_p = jnp.full((1, A_store), NEG_BIG, jnp.float32).at[:, :A].set(b2)
    w1 = w1.astype(mxu_dtype)   # resident weights only; x stays in its input dtype

    # Batch tiling: tb multiple of 8 sublanes; cap at ceil(B/2) so the "parallel"
    # batch axis has >= 2 grid steps (v7x has 2 TensorCores per chip).
    B8 = _round_up(B, 8)
    tb = min(_round_up(min(block_b, B8), 8), B8)
    if B8 >= 16:
        tb = min(tb, _round_up(pl.cdiv(B8, 2), 8))
    grid_b = pl.cdiv(B8, tb)
    B_pad = grid_b * tb

    # Pad the batch only when needed (unconditional padding is an extra HBM pass).
    if B_pad == B:
        x_p = x
    else:
        x_p = jnp.zeros((B_pad, S), x.dtype).at[:B, :].set(x)

    # Explicit VMEM budget: double-buffered x/out tiles + resident weights + a
    # generous allowance for the h / logits / probs intermediates (full-lane vregs).
    itemsize = lambda dt: jnp.dtype(dt).itemsize
    x_tile_b = tb * S * itemsize(x_p.dtype)
    o_tile_b = tb * A_store * itemsize(out_dtype)
    w_b = (S * H + H * A_store) * itemsize(mxu_dtype) + (H + A_store) * 4
    inter_b = tb * (H + 3 * max(A_store, 128)) * 4
    vmem_budget = 2 * x_tile_b + 2 * o_tile_b + w_b + inter_b
    vmem_limit = int(min(max(2 * vmem_budget, 16 * 1024 * 1024), 64 * 1024 * 1024))

    cost = pl.CostEstimate(
        flops=2 * B_pad * (S * H + H * A_store),
        transcendentals=B_pad * (A_store + 1),                      # exp + reciprocal
        bytes_accessed=(x_p.size * x_p.dtype.itemsize
                        + w1.size * w1.dtype.itemsize + b1.size * 4
                        + w2_p.size * w2_p.dtype.itemsize + b2_p.size * 4
                        + B_pad * A_store * itemsize(out_dtype)),
    )

    resident = lambda i: (0, 0)     # weights/biases: same block every grid step
    kernel = functools.partial(policy_net_kernel, exp_dtype=exp_dtype)
    probs_pad = pl.pallas_call(
        kernel,
        out_shape=jax.ShapeDtypeStruct((B_pad, A_store), out_dtype),
        grid=(grid_b,),
        in_specs=[
            pl.BlockSpec((tb, S), lambda i: (i, 0)),     # x tile, pipelined
            pl.BlockSpec((S, H), resident),              # w1
            pl.BlockSpec((1, H), resident),              # b1
            pl.BlockSpec((H, A_store), resident),        # w2 (compact-padded)
            pl.BlockSpec((1, A_store), resident),        # b2 (compact-padded)
        ],
        out_specs=pl.BlockSpec((tb, A_store), lambda i: (i, 0)),
        compiler_params=pltpu.CompilerParams(
            dimension_semantics=("parallel",),
            vmem_limit_bytes=vmem_limit),
        cost_estimate=cost,
    )(x_p, w1, b1, w2_p, b2_p)
    # TODO(synk): if a profile still shows exposed output DMA at step boundaries,
    # add pipeline_mode=pl.Buffered(3) on the x/out BlockSpecs.

    if B_pad == B and A_store == A:
        return probs_pad
    return probs_pad[:B, :A]


def init_params(key, state_dim, hidden_dim, action_num):
    """Deterministic PyTorch-Linear-style init (uniform in +/- 1/sqrt(fan_in))."""
    k1, k2, k3, k4 = jax.random.split(key, 4)
    bound1 = 1.0 / jnp.sqrt(state_dim)
    bound2 = 1.0 / jnp.sqrt(hidden_dim)
    # stored as [in, out] so the kernel computes x @ W
    w1 = jax.random.uniform(k1, (state_dim, hidden_dim), jnp.float32, -bound1, bound1)
    b1 = jax.random.uniform(k2, (1, hidden_dim), jnp.float32, -bound1, bound1)
    w2 = jax.random.uniform(k3, (hidden_dim, action_num), jnp.float32, -bound2, bound2)
    b2 = jax.random.uniform(k4, (1, action_num), jnp.float32, -bound2, bound2)
    return w1, b1, w2, b2


if __name__ == "__main__":
    # Small shapes consistent with the module: batch=8 states of dim 16,
    # hidden_dim=32, action_num=4.
    B, S, H, A = 8, 16, 32, 4

    key = jax.random.PRNGKey(0)
    kx, kx2, kp = jax.random.split(key, 3)
    x = jax.random.normal(kx, (B, S), jnp.float32)
    w1, b1, w2, b2 = init_params(kp, S, H, A)

    def reference(xv):
        h = jnp.maximum(xv @ w1 + b1, 0.0)
        return jax.nn.softmax(h @ w2 + b2, axis=1)

    # f32 path (default, v5e-safe): strict tolerance.
    probs = jax.block_until_ready(policy_net_forward(x, w1, b1, w2, b2))
    assert probs.shape == (B, A)
    assert jnp.allclose(probs, reference(x), atol=1e-5, rtol=1e-5)
    assert jnp.allclose(jnp.sum(probs, axis=1), 1.0, atol=1e-5)

    # Ragged batch with >1 grid step (exercises tiling, tail padding, 2-core split).
    B2 = 300
    x2 = jax.random.normal(kx2, (B2, S), jnp.float32)
    probs2 = jax.block_until_ready(policy_net_forward(x2, w1, b1, w2, b2))
    assert probs2.shape == (B2, A)
    assert jnp.allclose(probs2, reference(x2), atol=1e-5, rtol=1e-5)
    assert jnp.allclose(jnp.sum(probs2, axis=1), 1.0, atol=1e-5)

    # bf16 resident-weight MXU path (v6e/v7x): looser tolerance; the softmax
    # normalization stays f32. (On v6e/v7x one may also pass exp_dtype=jnp.bfloat16.)
    probs_bf16 = jax.block_until_ready(
        policy_net_forward(x, w1, b1, w2, b2, mxu_dtype=jnp.bfloat16))
    assert jnp.allclose(probs_bf16, reference(x), atol=2e-2)
    assert jnp.allclose(jnp.sum(probs_bf16, axis=1), 1.0, atol=1e-5)

    print("KERNEL_OK")
</pallas_src>

<mosaic_0001>
module attributes {stable_mosaic.version = 11 : i64} {
  func.func @policy_net_kernel(%arg0: i32, %arg1: memref<8x16xf32, #tpu.memory_space<vmem>>, %arg2: memref<16x32xf32, #tpu.memory_space<vmem>>, %arg3: memref<1x32xf32, #tpu.memory_space<vmem>>, %arg4: memref<32x8xf32, #tpu.memory_space<vmem>>, %arg5: memref<1x8xf32, #tpu.memory_space<vmem>>, %arg6: memref<8x8xf32, #tpu.memory_space<vmem>>) attributes {dimension_semantics = [#tpu.dimension_semantics<parallel>], iteration_bounds = array<i64: 1>, scalar_prefetch = 0 : i64, scratch_operands = 0 : i64, tpu.core_type = #tpu.core_type<tc>, window_params = [{transform_indices = @transform_0, window_bounds = array<i64: 8, 16>}, {pipeline_mode = #tpu.pipeline_mode<synchronous>, transform_indices = @transform_1, window_bounds = array<i64: 16, 32>}, {pipeline_mode = #tpu.pipeline_mode<synchronous>, transform_indices = @transform_2, window_bounds = array<i64: 1, 32>}, {pipeline_mode = #tpu.pipeline_mode<synchronous>, transform_indices = @transform_3, window_bounds = array<i64: 32, 8>}, {pipeline_mode = #tpu.pipeline_mode<synchronous>, transform_indices = @transform_4, window_bounds = array<i64: 1, 8>}, {transform_indices = @transform_5, window_bounds = array<i64: 8, 8>}]} {
    %c0 = arith.constant 0 : index
    %c0_0 = arith.constant 0 : index
    %0 = vector.load %arg1[%c0, %c0_0] : memref<8x16xf32, #tpu.memory_space<vmem>>, vector<8x16xf32>
    %c0_1 = arith.constant 0 : index
    %c0_2 = arith.constant 0 : index
    %1 = vector.load %arg2[%c0_1, %c0_2] : memref<16x32xf32, #tpu.memory_space<vmem>>, vector<16x32xf32>
    %cst = arith.constant dense<0.000000e+00> : vector<8x32xf32>
    %2 = tpu.matmul %0, %1, %cst {dimension_numbers = #tpu.dot_dimension_numbers<[1], [0], [0], [1], [0, 0, 1, 1], [], []>} : vector<8x16xf32>, vector<16x32xf32>, vector<8x32xf32> -> vector<8x32xf32>
    %c0_3 = arith.constant 0 : index
    %c0_4 = arith.constant 0 : index
    %3 = vector.load %arg3[%c0_3, %c0_4] : memref<1x32xf32, #tpu.memory_space<vmem>>, vector<1x32xf32>
    %4 = vector.broadcast %3 : vector<1x32xf32> to vector<8x32xf32>
    %5 = arith.addf %2, %4 : vector<8x32xf32>
    %cst_5 = arith.constant 0.000000e+00 : f32
    %6 = vector.broadcast %cst_5 : f32 to vector<8x32xf32>
    %7 = arith.maximumf %5, %6 : vector<8x32xf32>
    %c0_6 = arith.constant 0 : index
    %c0_7 = arith.constant 0 : index
    %8 = vector.load %arg4[%c0_6, %c0_7] : memref<32x8xf32, #tpu.memory_space<vmem>>, vector<32x8xf32>
    %cst_8 = arith.constant dense<0.000000e+00> : vector<8x8xf32>
    %9 = tpu.matmul %7, %8, %cst_8 {dimension_numbers = #tpu.dot_dimension_numbers<[1], [0], [0], [1], [0, 0, 1, 1], [], []>} : vector<8x32xf32>, vector<32x8xf32>, vector<8x8xf32> -> vector<8x8xf32>
    %c0_9 = arith.constant 0 : index
    %c0_10 = arith.constant 0 : index
    %10 = vector.load %arg5[%c0_9, %c0_10] : memref<1x8xf32, #tpu.memory_space<vmem>>, vector<1x8xf32>
    %11 = vector.broadcast %10 : vector<1x8xf32> to vector<8x8xf32>
    %12 = arith.addf %9, %11 : vector<8x8xf32>
    %cst_11 = arith.constant dense<0xFF800000> : vector<8xf32>
    %13 = vector.multi_reduction <maximumf>, %12, %cst_11 [1] : vector<8x8xf32> to vector<8xf32>
    %14 = vector.shape_cast %13 : vector<8xf32> to vector<8x1xf32>
    %15 = vector.broadcast %14 : vector<8x1xf32> to vector<8x8xf32>
    %16 = arith.subf %12, %15 : vector<8x8xf32>
    %17 = math.exp %16 : vector<8x8xf32>
    %cst_12 = arith.constant dense<0.000000e+00> : vector<8xf32>
    %18 = vector.multi_reduction <add>, %17, %cst_12 [1] : vector<8x8xf32> to vector<8xf32>
    %19 = vector.shape_cast %18 : vector<8xf32> to vector<8x1xf32>
    %20 = tpu.reciprocal %19 {approx = true} : vector<8x1xf32> -> vector<8x1xf32>
    %21 = arith.mulf %19, %20 : vector<8x1xf32>
    %cst_13 = arith.constant 2.000000e+00 : f32
    %22 = vector.broadcast %cst_13 : f32 to vector<8x1xf32>
    %23 = arith.subf %22, %21 : vector<8x1xf32>
    %24 = arith.mulf %20, %23 : vector<8x1xf32>
    %25 = vector.broadcast %24 : vector<8x1xf32> to vector<8x8xf32>
    %26 = arith.mulf %17, %25 : vector<8x8xf32>
    %c0_14 = arith.constant 0 : index
    %c0_15 = arith.constant 0 : index
    %27 = vector.load %arg6[%c0_14, %c0_15] : memref<8x8xf32, #tpu.memory_space<vmem>>, vector<8x8xf32>
    tpu.vector_store %arg6[%c0_14, %c0_15], %26 {strides = array<i32>} : memref<8x8xf32, #tpu.memory_space<vmem>>, vector<8x8xf32>,
    return
  }
  func.func @transform_0(%arg0: i32) -> (i32, i32) {
    %c0_i32 = arith.constant 0 : i32
    %c0_i32_0 = arith.constant 0 : i32
    return %arg0, %c0_i32 : i32, i32
  }
  func.func @transform_1(%arg0: i32) -> (i32, i32) {
    %c0_i32 = arith.constant 0 : i32
    %c0_i32_0 = arith.constant 0 : i32
    %c0_i32_1 = arith.constant 0 : i32
    return %c0_i32, %c0_i32_0 : i32, i32
  }
  func.func @transform_2(%arg0: i32) -> (i32, i32) {
    %c0_i32 = arith.constant 0 : i32
    %c0_i32_0 = arith.constant 0 : i32
    %c0_i32_1 = arith.constant 0 : i32
    return %c0_i32, %c0_i32_0 : i32, i32
  }
  func.func @transform_3(%arg0: i32) -> (i32, i32) {
    %c0_i32 = arith.constant 0 : i32
    %c0_i32_0 = arith.constant 0 : i32
    %c0_i32_1 = arith.constant 0 : i32
    return %c0_i32, %c0_i32_0 : i32, i32
  }
  func.func @transform_4(%arg0: i32) -> (i32, i32) {
    %c0_i32 = arith.constant 0 : i32
    %c0_i32_0 = arith.constant 0 : i32
    %c0_i32_1 = arith.constant 0 : i32
    return %c0_i32, %c0_i32_0 : i32, i32
  }
  func.func @transform_5(%arg0: i32) -> (i32, i32) {
    %c0_i32 = arith.constant 0 : i32
    %c0_i32_0 = arith.constant 0 : i32
    return %arg0, %c0_i32 : i32, i32
  }
}

</mosaic_0001>

<bundles_post_ra>
// kernel: tpu_custom_call.1
= control target key start
LH: loop header
LB: loop body
LE: loop exit
PB: predicated region body
PF: predicated region fallthrough
CT: control target
= control target key end

     0   :  { %vm28_vm0 = vcmask 130048   ;;  %s216_s0 = inlined_call_operand.vmem [shape: f32[8,16], index: 0, kind: input, shape index: {}]   ;;  %s217_s1 = inlined_call_operand.vmem [shape: f32[16,32], index: 1, kind: input, shape index: {}]   ;;  %s218_s2 = inlined_call_operand.vmem [shape: f32[1,32], index: 2, kind: input, shape index: {}]   ;;  %s219_s3 = inlined_call_operand.vmem [shape: f32[32,8], index: 3, kind: input, shape index: {}]   ;;  %s220_s4 = inlined_call_operand.vmem [shape: f32[1,8], index: 4, kind: input, shape index: {}]   ;;  %s221_s5 = inlined_call_operand.hbm [shape: f32[8,8], index: 5, kind: output, shape index: {}]  }
   0x1   :  { %v23_v0 = vld [vmem:[%s217_s1 + $0x8] sm:$0xff]  ;;  %v22_v1 = vld [vmem:[%s217_s1] sm:$0xff]  ;;  %v56_v3 = vld [vmem:[%s219_s3 + $0x18] sm:$0xff] }
   0x2   :  { %46 = vmatpush.msra.mxu0 %v23_v0  ;;  %v21_v2 = vld [vmem:[%s216_s0] sm:$0xff]  ;;  %77 = vmatpush.msra.mxu1 %v56_v3 }
   0x3   :  { %10 = vsyncpa [#allocation3], 0  ;;  %v55_v4 = vld [vmem:[%s219_s3 + $0x10] sm:$0xff]  ;;  %v54_v5 = vld [vmem:[%s219_s3 + $0x8] sm:$0xff]  ;;  %vm61_vm1 = vcmask 261120   ;;  %vm85_vm2 = vcmask 64512  }
   0x4   :  { %47 = vmatpush.msra.mxu0 %v22_v1  ;;  %78 = vmatpush.msra.mxu1 %v55_v4  ;;  %v53_v6 = vld [vmem:[%s219_s3] sm:$0xff]  ;;  %s108_s10 = sshll.u32 %s221_s5, 4  ;;  %s109_s10 = int_to_ptr.hbm [resolvable:$true] %s108_s10 }
   0x5   :  { %117 = vmatmul.msk.f32.vlgmr.msra.gmra.mxu0 %vm28_vm0, %v21_v2  ;;  %v120_v7 = vld [vmem:[%s218_s2] ss:$0 sm:$0xff]  ;;  %s152_s2 = smov [#allocation2]  }
   0x6   :  { %79 = vmatpush.msra.mxu1 %v54_v5  ;;  %v121_v11 = vld [vmem:[%s220_s4] ss:$0 sm:$0xff]  ;;  %s106_s3 = sshll.u32 %s152_s2, 4  ;;  %s107_s3 = int_to_ptr.vmem [resolvable:$true] %s106_s3 }
   0x8   :  { %80 = vmatpush.msra.mxu1 %v53_v6 }
  0x82   :  { %v49_v8 = vpop.f32.mrf.mxu0 }
  0x83   :  { %v50_v9 = vadd.f32 %v120_v7, %v49_v8 }
  0x85   :  { %v52_v10 = vmax.f32 %v50_v9, 0.0 }
  0x87   :  { %118 = vmatmul.msk.f32.vlgmr.msra.gmra.mxu1 %vm61_vm1, %v52_v10 }
 0x104   :  { %v82_v12 = vpop.f32.mrf.mxu1 }
 0x105   :  { %v83_v13 = vadd.f32 %v121_v11, %v82_v12 }
 0x107   :  { %v86_v14 = vsel %vm85_vm2, %v83_v13, -inf }
 0x108   :  { %87 = vmax.xlane.f32.xlu0 %v86_v14 }
 0x17b   :  { %v88_v15 = vpop.xlane.xlu0 %87 }
 0x17c   :  { %v89_v16 = vsub.f32 %v83_v13, %v88_v15 }
 0x17e   :  { %v90_v17 = vmul.f32 1.442695, %v89_v16 }
 0x180   :  { %122 = vpow2.f32 %v90_v17 }
 0x186   :  { %v123_v18 = vpop.eup %122 }
 0x187   :  { %v92_v19 = vsel %vm85_vm2, %v123_v18, 0.0 }
 0x188   :  { %93 = vadd.xlane.f32.xlu0 %v92_v19 }
 0x1fb   :  { %v94_v20 = vpop.xlane.xlu0 %93 }
 0x1fc   :  { %124 = vrcp.f32 %v94_v20 }
 0x202   :  { %v125_v21 = vpop.eup %124 }
 0x203   :  { %v96_v22 = vmul.f32 %v125_v21, %v94_v20 }
 0x205   :  { %v97_v23 = vsub.f32 2.0, %v96_v22 }
 0x207   :  { %v98_v24 = vmul.f32 %v125_v21, %v97_v23 }
 0x209   :  { %v99_v25 = vmul.f32 %v123_v18, %v98_v24 }
 0x20b   :  { %100 = vst.msk [vmem:[#allocation2] sm:$0xff] %vm85_vm2, %v99_v25 }
 0x20c   :  { %111 = dma.vmem_to_hbm [thread:$0]  %s107_s3, 128, %s109_s10, [#allocation3]  }
 0x20d   :  { %150 = dma.done.wait [#allocation3], 128  }
 0x20e   :  { %151 = vsyncadd [#allocation3], 4294967168 }
 0x20f   :  { %116 = vsyncpa [#allocation3], 1 }

</bundles_post_ra>
